<compile_context>
chip_gen: v5e
topology: v5e:2x2
jax: 0.10.0
libtpu: 0.0.40
codegen_flags: <defaults>
</compile_context>

<pallas_src>
from functools import partial

import jax
import jax.numpy as jnp
from jax import lax
from jax.experimental import pallas as pl
from jax.experimental.pallas import tpu as pltpu

NEG_SLOPE = 0.01  # nn.LeakyReLU default


def _leaky(x):
    return jnp.where(x > 0, x, NEG_SLOPE * x)


def bottleneck_kernel(x_ref, w1_ref, w2_ref, w3_ref,
                      b1_ref, b2_ref, b3_ref, o_ref, *, seq_len):
    # x_ref: (R, Cin) block of flattened (batch*seq) rows; R = bpb * seq_len,
    # i.e. the block always contains whole batch elements.
    x = x_ref[...]                                                  # (R, Cin) f32
    R = x.shape[0]
    x_bf = x.astype(jnp.bfloat16)

    # conv1x1 (Cin -> W) with bn1 folded into w1/b1, + leaky_relu.
    h = jnp.dot(x_bf, w1_ref[...], preferred_element_type=jnp.float32) + b1_ref[...]
    h = _leaky(h)                                                   # (R, W) f32

    # conv3x3 (W -> W, pad=1, stride=1): three accumulated MXU dots.
    #   out[l] = h[l-1] @ W2_0 + h[l] @ W2_1 + h[l+1] @ W2_2
    # Shifted copies via XLU roll along the row (sublane) axis; boundary mask
    # uses row % seq_len so batch boundaries inside the block are zero-padded.
    row = lax.broadcasted_iota(jnp.int32, h.shape, 0)
    pos = row % seq_len
    h_prev = jnp.where(pos == 0, 0.0,
                       pltpu.roll(h, shift=1, axis=0)).astype(jnp.bfloat16)
    h_next = jnp.where(pos == seq_len - 1, 0.0,
                       pltpu.roll(h, shift=R - 1, axis=0)).astype(jnp.bfloat16)
    h_bf = h.astype(jnp.bfloat16)

    h2 = jnp.dot(h_prev, w2_ref[0], preferred_element_type=jnp.float32)
    h2 = h2 + jnp.dot(h_bf, w2_ref[1], preferred_element_type=jnp.float32)
    h2 = h2 + jnp.dot(h_next, w2_ref[2], preferred_element_type=jnp.float32)
    h2 = _leaky(h2 + b2_ref[...])                                   # (R, W) f32

    # conv1x1 (W -> Cout) with bn3 folded, + residual + leaky_relu.
    y = jnp.dot(h2.astype(jnp.bfloat16), w3_ref[...],
                preferred_element_type=jnp.float32)
    y = y + b3_ref[...] + x
    o_ref[...] = _leaky(y).astype(o_ref.dtype)


def fold_and_pack_weights(w1, w2, w3, s1, b1, s2, b2, s3, b3,
                          compute_dtype=jnp.bfloat16):
    """Fold eval-mode BN scale into conv weights, pre-transpose, cast to bf16.

    w1: (W, Cin), w2: (W, W, 3), w3: (Cout, W)  [PyTorch conv weight shapes,
    kernel-size-1 dims squeezed for the 1x1 convs].
    """
    w1s = (w1.T * s1[None, :]).astype(compute_dtype)                 # (Cin, W)
    # (3, W_in, W_out): w2s[k, i, o] = s2[o] * w2[o, i, k]
    w2s = (jnp.transpose(w2, (2, 1, 0)) * s2[None, None, :]).astype(compute_dtype)
    w3s = (w3.T * s3[None, :]).astype(compute_dtype)                 # (W, Cout)
    return (w1s, w2s, w3s,
            b1[None, :].astype(jnp.float32),
            b2[None, :].astype(jnp.float32),
            b3[None, :].astype(jnp.float32))


def _num_tensorcores():
    try:
        return max(1, int(getattr(jax.devices()[0], "num_cores", 1) or 1))
    except Exception:
        return 1


def _largest_divisor_leq(n, k):
    for d in range(min(n, k), 0, -1):
        if n % d == 0:
            return d
    return 1


def bottleneck_pallas(x_nlc, w1s, w2s, w3s, b1r, b2r, b3r, num_blocks=None):
    """x_nlc: (N, L, Cin) channels-last activations. Returns (N, L, Cout)."""
    N, L, Cin = x_nlc.shape
    width = w1s.shape[1]
    Cout = w3s.shape[1]
    assert Cin == Cout, (
        "identity residual requires inplanes == planes*expansion and no downsample")

    # Fat row blocks: 1 block on single-TC chips, num_cores blocks on megacore.
    if num_blocks is None:
        num_blocks = _largest_divisor_leq(N, _num_tensorcores())
    if N % num_blocks != 0 or ((N // num_blocks) * L) % 8 != 0:
        num_blocks = 1                       # fall back to one full-array block
    bpb = N // num_blocks                    # batch elements per block
    rows = bpb * L
    M = N * L

    x2d = x_nlc.reshape(M, Cin)              # free reshape (row-major NLC)

    def const_spec(arr):
        nd = arr.ndim
        return pl.BlockSpec(arr.shape, lambda i, _nd=nd: (0,) * _nd)

    act_bytes = jnp.dtype(x_nlc.dtype).itemsize
    flops = 2 * M * (Cin * width + 3 * width * width + width * Cout)
    bytes_accessed = (
        M * Cin * act_bytes + M * Cout * act_bytes
        + (w1s.size + w2s.size + w3s.size) * 2
        + (b1r.size + b2r.size + b3r.size) * 4)

    out2d = pl.pallas_call(
        partial(bottleneck_kernel, seq_len=L),
        out_shape=jax.ShapeDtypeStruct((M, Cout), x_nlc.dtype),
        grid=(num_blocks,),
        in_specs=[
            pl.BlockSpec((rows, Cin), lambda i: (i, 0)),
            const_spec(w1s), const_spec(w2s), const_spec(w3s),
            const_spec(b1r), const_spec(b2r), const_spec(b3r),
        ],
        out_specs=pl.BlockSpec((rows, Cout), lambda i: (i, 0)),
        compiler_params=pltpu.CompilerParams(
            dimension_semantics=("parallel",)),
        cost_estimate=pl.CostEstimate(
            flops=int(flops), transcendentals=0,
            bytes_accessed=int(bytes_accessed)),
    )(x2d, w1s, w2s, w3s, b1r, b2r, b3r)

    return out2d.reshape(N, L, Cout)


def reference_jax_nlc(x, w1, w2, w3, s1, b1, s2, b2, s3, b3):
    """Pure-JAX f32 reference in channels-last (N, L, C) layout."""
    def bn_af(y, s, b):
        y = y * s + b
        return jnp.where(y > 0, y, NEG_SLOPE * y)

    h = jnp.einsum('nlc,oc->nlo', x, w1)
    h = bn_af(h, s1, b1)
    hp = jnp.pad(h, ((0, 0), (1, 1), (0, 0)))
    h2 = (jnp.einsum('nlc,oc->nlo', hp[:, :-2], w2[:, :, 0])
          + jnp.einsum('nlc,oc->nlo', hp[:, 1:-1], w2[:, :, 1])
          + jnp.einsum('nlc,oc->nlo', hp[:, 2:], w2[:, :, 2]))
    h2 = bn_af(h2, s2, b2)
    y = jnp.einsum('nlc,oc->nlo', h2, w3)
    y = y * s3 + b3 + x
    return jnp.where(y > 0, y, NEG_SLOPE * y)


if __name__ == "__main__":
    # Bottleneck(inplanes=32, planes=8) -> width=8, out_channels=planes*4=32,
    # stride=1, groups=1, dilation=1, downsample=None (identity add valid).
    N, L = 2, 16
    planes = 8
    width = planes
    inplanes = planes * 4       # 32
    Cout = planes * 4           # 32

    key = jax.random.PRNGKey(0)
    ks = jax.random.split(key, 10)

    # Activations are kept channels-last end-to-end.
    x_nlc = jax.random.normal(ks[0], (N, L, inplanes), jnp.float32)

    # Conv weights (PyTorch shapes, kernel-size-1 dims squeezed for 1x1 convs).
    w1 = jax.random.normal(ks[1], (width, inplanes), jnp.float32) * 0.1
    w2 = jax.random.normal(ks[2], (width, width, 3), jnp.float32) * 0.1
    w3 = jax.random.normal(ks[3], (Cout, width), jnp.float32) * 0.1

    # BatchNorm (eval mode) params, folded to per-channel scale/shift.
    def bn_fold(k, C):
        kg, kb, km, kv = jax.random.split(k, 4)
        gamma = 1.0 + 0.1 * jax.random.normal(kg, (C,), jnp.float32)
        beta = 0.1 * jax.random.normal(kb, (C,), jnp.float32)
        mean = 0.1 * jax.random.normal(km, (C,), jnp.float32)
        var = jnp.abs(jax.random.normal(kv, (C,), jnp.float32)) + 0.5
        scale = gamma / jnp.sqrt(var + 1e-5)
        shift = beta - mean * scale
        return scale, shift

    s1, b1 = bn_fold(ks[4], width)
    s2, b2 = bn_fold(ks[5], width)
    s3, b3 = bn_fold(ks[6], Cout)

    # Weight prep (once, outside the hot path): fold BN, transpose, cast bf16.
    w1s, w2s, w3s, b1r, b2r, b3r = fold_and_pack_weights(
        w1, w2, w3, s1, b1, s2, b2, s3, b3)

    out_nlc = bottleneck_pallas(x_nlc, w1s, w2s, w3s, b1r, b2r, b3r)
    out_nlc = jax.block_until_ready(out_nlc)

    ref = reference_jax_nlc(x_nlc, w1, w2, w3, s1, b1, s2, b2, s3, b3)
    # bf16 MXU inputs with f32 accumulation -> loosened tolerance vs f32 ref.
    assert jnp.allclose(out_nlc, ref, atol=2e-2, rtol=2e-2), "mismatch vs reference"

    print("KERNEL_OK")
</pallas_src>

<mosaic_0001>
module attributes {stable_mosaic.version = 11 : i64} {
  func.func @bottleneck_kernel(%arg0: i32, %arg1: memref<32x32xf32, #tpu.memory_space<vmem>>, %arg2: memref<32x8xbf16, #tpu.memory_space<vmem>>, %arg3: memref<3x8x8xbf16, #tpu.memory_space<vmem>>, %arg4: memref<8x32xbf16, #tpu.memory_space<vmem>>, %arg5: memref<1x8xf32, #tpu.memory_space<vmem>>, %arg6: memref<1x8xf32, #tpu.memory_space<vmem>>, %arg7: memref<1x32xf32, #tpu.memory_space<vmem>>, %arg8: memref<32x32xf32, #tpu.memory_space<vmem>>) attributes {dimension_semantics = [#tpu.dimension_semantics<parallel>], iteration_bounds = array<i64: 1>, scalar_prefetch = 0 : i64, scratch_operands = 0 : i64, tpu.core_type = #tpu.core_type<tc>, window_params = [{transform_indices = @transform_0, window_bounds = array<i64: 32, 32>}, {pipeline_mode = #tpu.pipeline_mode<synchronous>, transform_indices = @transform_1, window_bounds = array<i64: 32, 8>}, {pipeline_mode = #tpu.pipeline_mode<synchronous>, transform_indices = @transform_2, window_bounds = array<i64: 3, 8, 8>}, {pipeline_mode = #tpu.pipeline_mode<synchronous>, transform_indices = @transform_3, window_bounds = array<i64: 8, 32>}, {pipeline_mode = #tpu.pipeline_mode<synchronous>, transform_indices = @transform_4, window_bounds = array<i64: 1, 8>}, {pipeline_mode = #tpu.pipeline_mode<synchronous>, transform_indices = @transform_5, window_bounds = array<i64: 1, 8>}, {pipeline_mode = #tpu.pipeline_mode<synchronous>, transform_indices = @transform_6, window_bounds = array<i64: 1, 32>}, {transform_indices = @transform_7, window_bounds = array<i64: 32, 32>}]} {
    %c0 = arith.constant 0 : index
    %c0_0 = arith.constant 0 : index
    %0 = vector.load %arg1[%c0, %c0_0] : memref<32x32xf32, #tpu.memory_space<vmem>>, vector<32x32xf32>
    %1 = arith.truncf %0 : vector<32x32xf32> to vector<32x32xbf16>
    %c0_1 = arith.constant 0 : index
    %c0_2 = arith.constant 0 : index
    %2 = vector.load %arg2[%c0_1, %c0_2] : memref<32x8xbf16, #tpu.memory_space<vmem>>, vector<32x8xbf16>
    %cst = arith.constant dense<0.000000e+00> : vector<32x8xf32>
    %3 = tpu.matmul %1, %2, %cst {dimension_numbers = #tpu.dot_dimension_numbers<[1], [0], [0], [1], [0, 0, 1, 1], [], []>} : vector<32x32xbf16>, vector<32x8xbf16>, vector<32x8xf32> -> vector<32x8xf32>
    %c0_3 = arith.constant 0 : index
    %c0_4 = arith.constant 0 : index
    %4 = vector.load %arg5[%c0_3, %c0_4] : memref<1x8xf32, #tpu.memory_space<vmem>>, vector<1x8xf32>
    %5 = vector.broadcast %4 : vector<1x8xf32> to vector<32x8xf32>
    %6 = arith.addf %3, %5 : vector<32x8xf32>
    %cst_5 = arith.constant 0.000000e+00 : f32
    %7 = vector.broadcast %cst_5 : f32 to vector<32x8xf32>
    %8 = arith.cmpf ogt, %6, %7 : vector<32x8xf32>
    %cst_6 = arith.constant 0.00999999977 : f32
    %9 = vector.broadcast %cst_6 : f32 to vector<32x8xf32>
    %10 = arith.mulf %9, %6 : vector<32x8xf32>
    %11 = arith.select %8, %6, %10 : vector<32x8xi1>, vector<32x8xf32>
    %12 = tpu.iota {dimensions = array<i32: 0>} : vector<32x8xi32>
    %c16_i32 = arith.constant 16 : i32
    %c0_i32 = arith.constant 0 : i32
    %13 = arith.cmpi eq, %c16_i32, %c0_i32 : i32
    %c1_i32 = arith.constant 1 : i32
    %14 = arith.select %13, %c1_i32, %c16_i32 : i32
    %15 = vector.broadcast %14 : i32 to vector<32x8xi32>
    %16 = arith.remsi %12, %15 : vector<32x8xi32>
    %c0_i32_7 = arith.constant 0 : i32
    %17 = vector.broadcast %c0_i32_7 : i32 to vector<32x8xi32>
    %18 = arith.cmpi ne, %16, %17 : vector<32x8xi32>
    %c0_i32_8 = arith.constant 0 : i32
    %19 = vector.broadcast %c0_i32_8 : i32 to vector<32x8xi32>
    %20 = arith.cmpi slt, %16, %19 : vector<32x8xi32>
    %c0_i32_9 = arith.constant 0 : i32
    %21 = arith.cmpi slt, %14, %c0_i32_9 : i32
    %22 = vector.broadcast %21 : i1 to vector<32x8xi1>
    %23 = vector.broadcast %22 : vector<32x8xi1> to vector<32x8xi1>
    %24 = arith.xori %20, %23 : vector<32x8xi1>
    %25 = arith.andi %24, %18 : vector<32x8xi1>
    %26 = vector.broadcast %14 : i32 to vector<32x8xi32>
    %27 = arith.addi %16, %26 : vector<32x8xi32>
    %28 = arith.select %25, %27, %16 : vector<32x8xi1>, vector<32x8xi32>
    %c0_i32_10 = arith.constant 0 : i32
    %29 = vector.broadcast %c0_i32_10 : i32 to vector<32x8xi32>
    %30 = arith.cmpi eq, %28, %29 : vector<32x8xi32>
    %c1_i32_11 = arith.constant 1 : i32
    %31 = tpu.dynamic_rotate %11 by %c1_i32_11 dim 0 : vector<32x8xf32>, i32 -> vector<32x8xf32>
    %cst_12 = arith.constant 0.000000e+00 : f32
    %32 = vector.broadcast %cst_12 : f32 to vector<32x8xf32>
    %33 = arith.select %30, %32, %31 : vector<32x8xi1>, vector<32x8xf32>
    %34 = arith.truncf %33 : vector<32x8xf32> to vector<32x8xbf16>
    %c15_i32 = arith.constant 15 : i32
    %35 = vector.broadcast %c15_i32 : i32 to vector<32x8xi32>
    %36 = arith.cmpi eq, %28, %35 : vector<32x8xi32>
    %c31_i32 = arith.constant 31 : i32
    %37 = tpu.dynamic_rotate %11 by %c31_i32 dim 0 : vector<32x8xf32>, i32 -> vector<32x8xf32>
    %cst_13 = arith.constant 0.000000e+00 : f32
    %38 = vector.broadcast %cst_13 : f32 to vector<32x8xf32>
    %39 = arith.select %36, %38, %37 : vector<32x8xi1>, vector<32x8xf32>
    %40 = arith.truncf %39 : vector<32x8xf32> to vector<32x8xbf16>
    %41 = arith.truncf %11 : vector<32x8xf32> to vector<32x8xbf16>
    %c0_14 = arith.constant 0 : index
    %c0_15 = arith.constant 0 : index
    %c0_16 = arith.constant 0 : index
    %42 = vector.load %arg3[%c0_14, %c0_15, %c0_16] : memref<3x8x8xbf16, #tpu.memory_space<vmem>>, vector<1x8x8xbf16>
    %43 = vector.shape_cast %42 : vector<1x8x8xbf16> to vector<8x8xbf16>
    %cst_17 = arith.constant dense<0.000000e+00> : vector<32x8xf32>
    %44 = tpu.matmul %34, %43, %cst_17 {dimension_numbers = #tpu.dot_dimension_numbers<[1], [0], [0], [1], [0, 0, 1, 1], [], []>} : vector<32x8xbf16>, vector<8x8xbf16>, vector<32x8xf32> -> vector<32x8xf32>
    %c1 = arith.constant 1 : index
    %c0_18 = arith.constant 0 : index
    %c0_19 = arith.constant 0 : index
    %45 = vector.load %arg3[%c1, %c0_18, %c0_19] : memref<3x8x8xbf16, #tpu.memory_space<vmem>>, vector<1x8x8xbf16>
    %46 = vector.shape_cast %45 : vector<1x8x8xbf16> to vector<8x8xbf16>
    %cst_20 = arith.constant dense<0.000000e+00> : vector<32x8xf32>
    %47 = tpu.matmul %41, %46, %cst_20 {dimension_numbers = #tpu.dot_dimension_numbers<[1], [0], [0], [1], [0, 0, 1, 1], [], []>} : vector<32x8xbf16>, vector<8x8xbf16>, vector<32x8xf32> -> vector<32x8xf32>
    %48 = arith.addf %44, %47 : vector<32x8xf32>
    %c2 = arith.constant 2 : index
    %c0_21 = arith.constant 0 : index
    %c0_22 = arith.constant 0 : index
    %49 = vector.load %arg3[%c2, %c0_21, %c0_22] : memref<3x8x8xbf16, #tpu.memory_space<vmem>>, vector<1x8x8xbf16>
    %50 = vector.shape_cast %49 : vector<1x8x8xbf16> to vector<8x8xbf16>
    %cst_23 = arith.constant dense<0.000000e+00> : vector<32x8xf32>
    %51 = tpu.matmul %40, %50, %cst_23 {dimension_numbers = #tpu.dot_dimension_numbers<[1], [0], [0], [1], [0, 0, 1, 1], [], []>} : vector<32x8xbf16>, vector<8x8xbf16>, vector<32x8xf32> -> vector<32x8xf32>
    %52 = arith.addf %48, %51 : vector<32x8xf32>
    %c0_24 = arith.constant 0 : index
    %c0_25 = arith.constant 0 : index
    %53 = vector.load %arg6[%c0_24, %c0_25] : memref<1x8xf32, #tpu.memory_space<vmem>>, vector<1x8xf32>
    %54 = vector.broadcast %53 : vector<1x8xf32> to vector<32x8xf32>
    %55 = arith.addf %52, %54 : vector<32x8xf32>
    %cst_26 = arith.constant 0.000000e+00 : f32
    %56 = vector.broadcast %cst_26 : f32 to vector<32x8xf32>
    %57 = arith.cmpf ogt, %55, %56 : vector<32x8xf32>
    %cst_27 = arith.constant 0.00999999977 : f32
    %58 = vector.broadcast %cst_27 : f32 to vector<32x8xf32>
    %59 = arith.mulf %58, %55 : vector<32x8xf32>
    %60 = arith.select %57, %55, %59 : vector<32x8xi1>, vector<32x8xf32>
    %61 = arith.truncf %60 : vector<32x8xf32> to vector<32x8xbf16>
    %c0_28 = arith.constant 0 : index
    %c0_29 = arith.constant 0 : index
    %62 = vector.load %arg4[%c0_28, %c0_29] : memref<8x32xbf16, #tpu.memory_space<vmem>>, vector<8x32xbf16>
    %cst_30 = arith.constant dense<0.000000e+00> : vector<32x32xf32>
    %63 = tpu.matmul %61, %62, %cst_30 {dimension_numbers = #tpu.dot_dimension_numbers<[1], [0], [0], [1], [0, 0, 1, 1], [], []>} : vector<32x8xbf16>, vector<8x32xbf16>, vector<32x32xf32> -> vector<32x32xf32>
    %c0_31 = arith.constant 0 : index
    %c0_32 = arith.constant 0 : index
    %64 = vector.load %arg7[%c0_31, %c0_32] : memref<1x32xf32, #tpu.memory_space<vmem>>, vector<1x32xf32>
    %65 = vector.broadcast %64 : vector<1x32xf32> to vector<32x32xf32>
    %66 = arith.addf %63, %65 : vector<32x32xf32>
    %67 = arith.addf %66, %0 : vector<32x32xf32>
    %cst_33 = arith.constant 0.000000e+00 : f32
    %68 = vector.broadcast %cst_33 : f32 to vector<32x32xf32>
    %69 = arith.cmpf ogt, %67, %68 : vector<32x32xf32>
    %cst_34 = arith.constant 0.00999999977 : f32
    %70 = vector.broadcast %cst_34 : f32 to vector<32x32xf32>
    %71 = arith.mulf %70, %67 : vector<32x32xf32>
    %72 = arith.select %69, %67, %71 : vector<32x32xi1>, vector<32x32xf32>
    %c0_35 = arith.constant 0 : index
    %c0_36 = arith.constant 0 : index
    %73 = vector.load %arg8[%c0_35, %c0_36] : memref<32x32xf32, #tpu.memory_space<vmem>>, vector<32x32xf32>
    tpu.vector_store %arg8[%c0_35, %c0_36], %72 {strides = array<i32>} : memref<32x32xf32, #tpu.memory_space<vmem>>, vector<32x32xf32>,
    return
  }
  func.func @transform_0(%arg0: i32) -> (i32, i32) {
    %c0_i32 = arith.constant 0 : i32
    %c0_i32_0 = arith.constant 0 : i32
    return %arg0, %c0_i32 : i32, i32
  }
  func.func @transform_1(%arg0: i32) -> (i32, i32) {
    %c0_i32 = arith.constant 0 : i32
    %c0_i32_0 = arith.constant 0 : i32
    %c0_i32_1 = arith.constant 0 : i32
    return %c0_i32, %c0_i32_0 : i32, i32
  }
  func.func @transform_2(%arg0: i32) -> (i32, i32, i32) {
    %c0_i32 = arith.constant 0 : i32
    %c0_i32_0 = arith.constant 0 : i32
    %c0_i32_1 = arith.constant 0 : i32
    %c0_i32_2 = arith.constant 0 : i32
    return %c0_i32, %c0_i32_0, %c0_i32_1 : i32, i32, i32
  }
  func.func @transform_3(%arg0: i32) -> (i32, i32) {
    %c0_i32 = arith.constant 0 : i32
    %c0_i32_0 = arith.constant 0 : i32
    %c0_i32_1 = arith.constant 0 : i32
    return %c0_i32, %c0_i32_0 : i32, i32
  }
  func.func @transform_4(%arg0: i32) -> (i32, i32) {
    %c0_i32 = arith.constant 0 : i32
    %c0_i32_0 = arith.constant 0 : i32
    %c0_i32_1 = arith.constant 0 : i32
    return %c0_i32, %c0_i32_0 : i32, i32
  }
  func.func @transform_5(%arg0: i32) -> (i32, i32) {
    %c0_i32 = arith.constant 0 : i32
    %c0_i32_0 = arith.constant 0 : i32
    %c0_i32_1 = arith.constant 0 : i32
    return %c0_i32, %c0_i32_0 : i32, i32
  }
  func.func @transform_6(%arg0: i32) -> (i32, i32) {
    %c0_i32 = arith.constant 0 : i32
    %c0_i32_0 = arith.constant 0 : i32
    %c0_i32_1 = arith.constant 0 : i32
    return %c0_i32, %c0_i32_0 : i32, i32
  }
  func.func @transform_7(%arg0: i32) -> (i32, i32) {
    %c0_i32 = arith.constant 0 : i32
    %c0_i32_0 = arith.constant 0 : i32
    return %arg0, %c0_i32 : i32, i32
  }
}

</mosaic_0001>

<bundles_post_ra>
// kernel: tpu_custom_call.1
= control target key start
LH: loop header
LB: loop body
LE: loop exit
PB: predicated region body
PF: predicated region fallthrough
CT: control target
= control target key end

     0   :  { %12 = vsyncpa [#allocation3], 0  ;;  %s593_s0 = inlined_call_operand.hbm [shape: f32[32,32], index: 0, kind: input, shape index: {}]   ;;  %s594_s1 = inlined_call_operand.vmem [shape: bf16[32,8], index: 1, kind: input, shape index: {}]   ;;  %s595_s2 = inlined_call_operand.vmem [shape: bf16[3,8,8], index: 2, kind: input, shape index: {}]   ;;  %s596_s3 = inlined_call_operand.vmem [shape: bf16[8,32], index: 3, kind: input, shape index: {}]   ;;  %s597_s4 = inlined_call_operand.vmem [shape: f32[1,8], index: 4, kind: input, shape index: {}]   ;;  %s598_s5 = inlined_call_operand.vmem [shape: f32[1,8], index: 5, kind: input, shape index: {}]   ;;  %s599_s6 = inlined_call_operand.vmem [shape: f32[1,32], index: 6, kind: input, shape index: {}]   ;;  %s600_s7 = inlined_call_operand.hbm [shape: f32[32,32], index: 7, kind: output, shape index: {}]  }
   0x1   :  { %13 = vsyncpa [#allocation4], 0  ;;  %s18_s26 = sshll.u32 %s593_s0, 4  ;;  %s472_s27 = smov [#allocation2]   ;;  %s19_s26 = int_to_ptr.hbm [resolvable:$true] %s18_s26 }
   0x2   :  { %s20_s28 = sshll.u32 %s472_s27, 4  ;;  %s473_s29 = smov 128   ;;  %s21_s28 = int_to_ptr.vmem [resolvable:$true] %s20_s28 }
   0x3   :  { %s474_s30 = smov 8  }
   0x4   :  { %26 = dma.hbm_to_vmem [thread:$0]  %s19_s26, 512, %s21_s28, [#allocation3], %s473_s29, %s473_s29, %s474_s30  }
   0x5   :  { %468 = dma.done.wait [#allocation3], 512  }
   0x6   :  { %469 = vsyncadd [#allocation3], 4294966784  ;;  %v411_v0 = vld [vmem:[%s594_s1 + $0x8] sm:$0xff]  ;;  %v410_v1 = vld [vmem:[%s594_s1] sm:$0xff]  ;;  %vm70_vm0 = vcmask 261120   ;;  %vm211_vm1 = vcmask 1043456   ;;  %v108_v18 = vlaneseq }
   0x7   :  { %v528_v2 = vld [vmem:[#allocation2] sm:$0xff]  ;;  %83 = vmatpush.bf16.msra.mxu0 %v411_v0  ;;  %v530_v3 = vld [vmem:[#allocation2 + $0x8] sm:$0xff]  ;;  %v535_v5 = vld [vmem:[#allocation2 + $0x10] sm:$0xff]  ;;  %vm204_vm4 = vcmask 64512   ;;  %s377_s23 = sshll.u32 %s600_s7, 4  ;;  %s378_s23 = int_to_ptr.hbm [resolvable:$true] %s377_s23 }
   0x8   :  { %v48_v4 = vpack.c.bf16 %v530_v3, %v528_v2  ;;  %v537_v6 = vld [vmem:[#allocation2 + $0x18] sm:$0xff]  ;;  %v400_v8 = vld [vmem:[%s595_s2 + $0x4] sm:$0xf]  ;;  %v405_v10 = vld [vmem:[%s595_s2 + $0x8] sm:$0xf]  ;;  %v109_v22 = vshrl.u32 %v108_v18, 7 }
   0x9   :  { %v49_v7 = vpack.c.bf16 %v537_v6, %v535_v5  ;;  %v213_v9 = vsel %vm211_vm1, %v400_v8, 0  ;;  %v271_v11 = vsel %vm211_vm1, %v405_v10, 0  ;;  %v201_v13 = vld [vmem:[%s595_s2] sm:$0xf] }
   0xa   :  { %222 = vmatpush.bf16.msra.mxu1 %v213_v9  ;;  %412 = vmatpush.bf16.msra.mxu2 %v213_v9  ;;  %v417_v14 = vld [vmem:[%s597_s4] ss:$0 sm:$0xff]  ;;  %v241_v15 = vsel %vm211_vm1, %v201_v13, 0  ;;  %v110_v26 = vadd.s32 8, %v109_v22  ;;  %vm188_vm7 = vcmp.lt.s32.totalorder %v109_v22, 7  ;;  %v112_v42 = vadd.s32 24, %v109_v22 }
   0xb   :  { %84 = vmatpush.bf16.msra.mxu0 %v410_v1  ;;  %280 = vmatpush.bf16.msra.mxu3 %v271_v11  ;;  %v117_v49 = vand.u32 15, %v109_v22  ;;  %vm169_vm10 = vcmp.lt.s32.totalorder %v109_v22, 1  ;;  %v111_v59 = vadd.s32 16, %v109_v22 }
   0xc   :  { %v124_v29 = vand.u32 15, %v110_v26  ;;  %v138_v46 = vand.u32 15, %v112_v42 }
   0xd   :  { %vm161_vm11 = vcmp.eq.s32.totalorder %v117_v49, 0  ;;  %v131_v61 = vand.u32 15, %v111_v59 }
   0xe   :  { %398 = vmatmul.msk.bf16.vlgmr.msra.gmra.mxu0 %vm70_vm0, %v48_v4  ;;  %250 = vmatpush.bf16.msrb.mxu2 %v241_v15  ;;  %vm181_vm6 = vcmp.eq.s32.totalorder %v124_v29, 15  ;;  %vm183_vm9 = vcmp.eq.s32.totalorder %v138_v46, 15  ;;  %v318_v4 = vld [vmem:[%s596_s3] sm:$0xf] }
   0xf   :  { %vm163_vm12 = vcmp.eq.s32.totalorder %v131_v61, 0  ;;  %v418_v15 = vld [vmem:[%s598_s5] ss:$0 sm:$0xff] }
  0x1e   :  { %399 = vmatmul.msk.bf16.gmra.mxu0 %vm70_vm0, %v49_v7  ;;  %v330_v7 = vsel %vm211_vm1, %v318_v4, 0 }
  0x1f   :  { %339 = vmatpush.bf16.msrb.mxu1 %v330_v7 }
  0x8b   :  { %v86_v12 = vpop.f32.mrf.mxu0 }
  0x8c   :  { %v87_v16 = vadd.f32 %v417_v14, %v86_v12 }
  0x8e   :  { %v100_v19 = vmul.f32 0.01, %v87_v16  ;;  %vm96_vm2 = vcmp.gt.f32.partialorder %v87_v16, 0.0 }
  0x90   :  { %v104_v23 = vsel %vm96_vm2, %v87_v16, %v100_v19 }
  0x91   :  { %v184_v34 = vrot.slane %v104_v23, 1  ;;  %v165_v50 = vrot.slane %v104_v23, 7 }
  0x93   :  { %v88_v17 = vpop.f32.mrf.mxu0 }
  0x94   :  { %v89_v20 = vadd.f32 %v417_v14, %v88_v17 }
  0x96   :  { %vm97_vm3 = vcmp.gt.f32.partialorder %v89_v20, 0.0  ;;  %v101_v21 = vmul.f32 0.01, %v89_v20 }
  0x98   :  { %v105_v24 = vsel %vm97_vm3, %v89_v20, %v101_v21 }
  0x99   :  { %v199_v25 = vpack.c.bf16 %v105_v24, %v104_v23  ;;  %v185_v31 = vrot.slane %v105_v24, 1  ;;  %v166_v54 = vrot.slane %v105_v24, 7 }
  0x9b   :  { %v91_v27 = vpop.f32.mrf.mxu0  ;;  %401 = vmatmul.msk.bf16.vlgmr.msra.gmra.mxu1 %vm204_vm4, %v199_v25  ;;  %v191_v38 = vsel %vm188_vm7, %v184_v34, %v185_v31  ;;  %v172_v57 = vsel %vm169_vm10, %v165_v50, %v166_v54 }
  0x9c   :  { %v92_v28 = vadd.f32 %v417_v14, %v91_v27 }
  0x9e   :  { %vm98_vm5 = vcmp.gt.f32.partialorder %v92_v28, 0.0  ;;  %v102_v30 = vmul.f32 0.01, %v92_v28 }
  0xa0   :  { %v106_v32 = vsel %vm98_vm5, %v92_v28, %v102_v30 }
  0xa1   :  { %v186_v33 = vrot.slane %v106_v32, 1  ;;  %v167_v60 = vrot.slane %v106_v32, 7 }
  0xa3   :  { %v93_v35 = vpop.f32.mrf.mxu0  ;;  %v190_v36 = vsel %vm188_vm7, %v185_v31, %v186_v33  ;;  %v171_v62 = vsel %vm169_vm10, %v166_v54, %v167_v60 }
  0xa4   :  { %v94_v37 = vadd.f32 %v417_v14, %v93_v35  ;;  %v194_v39 = vsel %vm181_vm6, 0.0, %v190_v36  ;;  %v176_v0 = vsel %vm163_vm12, 0.0, %v171_v62 }
  0xa5   :  { %v197_v40 = vpack.c.bf16 %v194_v39, %v191_v38 }
  0xa6   :  { %vm99_vm8 = vcmp.gt.f32.partialorder %v94_v37, 0.0  ;;  %v103_v41 = vmul.f32 0.01, %v94_v37 }
  0xa7   :  { %406 = vmatmul.msk.bf16.vlgmr.msra.gmra.mxu3 %vm204_vm4, %v197_v40 }
  0xa8   :  { %v107_v43 = vsel %vm99_vm8, %v94_v37, %v103_v41 }
  0xa9   :  { %v200_v44 = vpack.c.bf16 %v107_v43, %v106_v32  ;;  %v187_v45 = vrot.slane %v107_v43, 1  ;;  %v168_v47 = vrot.slane %v107_v43, 7  ;;  %v419_v43 = vld [vmem:[%s599_s6] ss:$0 sm:$0xff]  ;;  %s475_s6 = smov [#allocation5]  }
  0xaa   :  { %s375_s20 = sshll.u32 %s475_s6, 4  ;;  %s376_s20 = int_to_ptr.vmem [resolvable:$true] %s375_s20 }
  0xab   :  { %402 = vmatmul.msk.bf16.vlgmr.msra.gmra.mxu2 %vm204_vm4, %v200_v44  ;;  %v192_v48 = vsel %vm188_vm7, %v187_v45, %v184_v34  ;;  %v189_v51 = vsel %vm188_vm7, %v186_v33, %v187_v45  ;;  %v173_v53 = vsel %vm169_vm10, %v168_v47, %v165_v50  ;;  %v170_v63 = vsel %vm169_vm10, %v167_v60, %v168_v47 }
  0xac   :  { %v196_v52 = vsel %vm183_vm9, 0.0, %v192_v48  ;;  %v174_v56 = vsel %vm161_vm11, 0.0, %v173_v53  ;;  %v179_v1 = vpack.c.bf16 %v170_v63, %v176_v0 }
  0xad   :  { %v198_v55 = vpack.c.bf16 %v196_v52, %v189_v51  ;;  %v178_v58 = vpack.c.bf16 %v172_v57, %v174_v56 }
  0xb7   :  { %407 = vmatmul.msk.bf16.gmra.mxu3 %vm204_vm4, %v198_v55 }
  0xbb   :  { %403 = vmatmul.msk.bf16.vlgmr.msrb.gmra.mxu2 %vm204_vm4, %v178_v58 }
  0xcb   :  { %404 = vmatmul.msk.bf16.gmra.mxu2 %vm204_vm4, %v179_v1 }
 0x118   :  { %v224_v11 = vpop.f32.mrf.mxu1 }
 0x120   :  { %v226_v17 = vpop.f32.mrf.mxu1 }
 0x12a   :  { %v282_v10 = vpop.f32.mrf.mxu3 }
 0x12e   :  { %v229_v8 = vpop.f32.mrf.mxu2 }
 0x132   :  { %v284_v16 = vpop.f32.mrf.mxu3 }
 0x136   :  { %v231_v9 = vpop.f32.mrf.mxu2 }
 0x13a   :  { %v287_v25 = vpop.f32.mrf.mxu3 }
 0x13e   :  { %v252_v12 = vpop.f32.mrf.mxu2 }
 0x13f   :  { %v253_v13 = vadd.f32 %v252_v12, %v224_v11 }
 0x141   :  { %v292_v14 = vadd.f32 %v282_v10, %v253_v13 }
 0x142   :  { %v289_v35 = vpop.f32.mrf.mxu3 }
 0x143   :  { %v300_v19 = vadd.f32 %v418_v15, %v292_v14 }
 0x145   :  { %v308_v22 = vmul.f32 0.01, %v300_v19  ;;  %vm304_vm13 = vcmp.gt.f32.partialorder %v300_v19, 0.0 }
 0x146   :  { %v254_v18 = vpop.f32.mrf.mxu2 }
 0x147   :  { %v255_v20 = vadd.f32 %v254_v18, %v226_v17  ;;  %v312_v28 = vsel %vm304_vm13, %v300_v19, %v308_v22 }
 0x149   :  { %v293_v21 = vadd.f32 %v284_v16, %v255_v20 }
 0x14b   :  { %v301_v23 = vadd.f32 %v418_v15, %v293_v21 }
 0x14d   :  { %vm305_vm14 = vcmp.gt.f32.partialorder %v301_v23, 0.0  ;;  %v309_v24 = vmul.f32 0.01, %v301_v23 }
 0x14e   :  { %v257_v26 = vpop.f32.mrf.mxu2 }
 0x14f   :  { %v258_v27 = vadd.f32 %v257_v26, %v229_v8  ;;  %v313_v29 = vsel %vm305_vm14, %v301_v23, %v309_v24 }
 0x150   :  { %v316_v30 = vpack.c.bf16 %v313_v29, %v312_v28 }
 0x151   :  { %v294_v31 = vadd.f32 %v287_v25, %v258_v27 }
 0x152   :  { %408 = vmatmul.msk.bf16.vlgmr.msrb.gmra.mxu1 %vm204_vm4, %v316_v30 }
 0x153   :  { %v302_v33 = vadd.f32 %v418_v15, %v294_v31 }
 0x155   :  { %v310_v37 = vmul.f32 0.01, %v302_v33  ;;  %vm306_vm15 = vcmp.gt.f32.partialorder %v302_v33, 0.0 }
 0x156   :  { %v259_v32 = vpop.f32.mrf.mxu2 }
 0x157   :  { %v260_v34 = vadd.f32 %v259_v32, %v231_v9  ;;  %v314_v40 = vsel %vm306_vm15, %v302_v33, %v310_v37 }
 0x159   :  { %v295_v36 = vadd.f32 %v289_v35, %v260_v34 }
 0x15b   :  { %v303_v38 = vadd.f32 %v418_v15, %v295_v36 }
 0x15d   :  { %v311_v39 = vmul.f32 0.01, %v303_v38  ;;  %vm307_vm1 = vcmp.gt.f32.partialorder %v303_v38, 0.0 }
 0x15f   :  { %v315_v41 = vsel %vm307_vm1, %v303_v38, %v311_v39 }
 0x160   :  { %v317_v42 = vpack.c.bf16 %v315_v41, %v314_v40 }
 0x162   :  { %409 = vmatmul.msk.bf16.gmra.mxu1 %vm204_vm4, %v317_v42 }
 0x1cf   :  { %v341_v44 = vpop.f32.mrf.mxu1 }
 0x1d0   :  { %v342_v45 = vadd.f32 %v419_v43, %v341_v44 }
 0x1d2   :  { %v351_v46 = vadd.f32 %v342_v45, %v528_v2 }
 0x1d4   :  { %vm355_vm2 = vcmp.gt.f32.partialorder %v351_v46, 0.0  ;;  %v359_v47 = vmul.f32 0.01, %v351_v46 }
 0x1d6   :  { %v363_v48 = vsel %vm355_vm2, %v351_v46, %v359_v47 }
 0x1d7   :  { %367 = vst.msk [vmem:[#allocation5] sm:$0xff] %vm70_vm0, %v363_v48  ;;  %v343_v49 = vpop.f32.mrf.mxu1 }
 0x1d8   :  { %v344_v50 = vadd.f32 %v419_v43, %v343_v49 }
 0x1da   :  { %v352_v51 = vadd.f32 %v344_v50, %v530_v3 }
 0x1dc   :  { %vm356_vm3 = vcmp.gt.f32.partialorder %v352_v51, 0.0  ;;  %v360_v52 = vmul.f32 0.01, %v352_v51 }
 0x1de   :  { %v364_v53 = vsel %vm356_vm3, %v352_v51, %v360_v52 }
 0x1df   :  { %368 = vst.msk [vmem:[#allocation5 + $0x8] sm:$0xff] %vm70_vm0, %v364_v53  ;;  %v346_v54 = vpop.f32.mrf.mxu1 }
 0x1e0   :  { %v347_v55 = vadd.f32 %v419_v43, %v346_v54 }
 0x1e2   :  { %v353_v56 = vadd.f32 %v347_v55, %v535_v5 }
 0x1e4   :  { %vm357_vm4 = vcmp.gt.f32.partialorder %v353_v56, 0.0  ;;  %v361_v2 = vmul.f32 0.01, %v353_v56 }
 0x1e6   :  { %v365_v57 = vsel %vm357_vm4, %v353_v56, %v361_v2 }
 0x1e7   :  { %369 = vst.msk [vmem:[#allocation5 + $0x10] sm:$0xff] %vm70_vm0, %v365_v57  ;;  %v348_v58 = vpop.f32.mrf.mxu1 }
 0x1e8   :  { %v349_v59 = vadd.f32 %v419_v43, %v348_v58 }
 0x1ea   :  { %v354_v60 = vadd.f32 %v349_v59, %v537_v6 }
 0x1ec   :  { %vm358_vm5 = vcmp.gt.f32.partialorder %v354_v60, 0.0  ;;  %v362_v3 = vmul.f32 0.01, %v354_v60 }
 0x1ee   :  { %v366_v5 = vsel %vm358_vm5, %v354_v60, %v362_v3 }
 0x1ef   :  { %370 = vst.msk [vmem:[#allocation5 + $0x18] sm:$0xff] %vm70_vm0, %v366_v5 }
 0x1f0   :  { %383 = dma.vmem_to_hbm [thread:$0]  %s376_s20, 512, %s378_s23, [#allocation4], %s473_s29, %s473_s29, %s474_s30  }
 0x1f1   :  { %470 = dma.done.wait [#allocation4], 512  }
 0x1f2   :  { %471 = vsyncadd [#allocation4], 4294966784 }
 0x1f3   :  { %388 = vsyncpa [#allocation3], 1 }
 0x1f4   :  { %389 = vsyncpa [#allocation4], 1 }

</bundles_post_ra>
